<compile_context>
chip_gen: v5e
topology: v5e:2x2
jax: 0.10.0
libtpu: 0.0.40
codegen_flags: <defaults>
</compile_context>

<pallas_src>
import numpy as np
import jax
import jax.numpy as jnp
from jax.experimental import pallas as pl
from jax.experimental.pallas import tpu as pltpu

_EPS = 1e-5                                   # nn.InstanceNorm2d default eps
_ATAN1 = np.float32(np.arctan(1.0))           # pi/4, the only non-0.5 value left
_HALF = np.float32(0.5)

# Ordered, de-duplicated API list returned by the original module.
_USED_APIS = [
    'torch.nn.InstanceNorm2d', 'torch.Tensor.round_', 'torch.Tensor.cos',
    'torch.Tensor.lt_', 'torch.Tensor.trunc_', 'torch.Tensor.arctan',
    'torch.Tensor.masked_fill', 'torch.fmax', 'torch.fft.ifft2', 'torch.mm',
]

# Below this spatial size the mm+ifft2 stage is microseconds of MXU work and
# the extra pallas_call dispatch dominates -> let XLA handle it (review).
_MM_IDFT_PALLAS_MIN_H = 128


def _tpu_topology():
    """(tensorcores_per_chip, vmem_capacity_bytes) with safe fallbacks."""
    vmem_cap = 64 * 1024 * 1024               # conservative default (v7x per-TC)
    try:
        info = pltpu.get_tpu_info()
        vmem_cap = int(getattr(info, "vmem_capacity_bytes", vmem_cap))
    except Exception:
        pass
    kind = ""
    try:
        kind = jax.devices()[0].device_kind.lower()
    except Exception:
        pass
    two_core = any(t in kind for t in ("v4", "v5p", "v7", "tpu7"))
    return (2 if two_core else 1), vmem_cap


def _pick_row_block(n_rows, row_bytes, n_par, budget_bytes, align):
    """Rows per grid step: aligned to `align`, sized from the per-buffer VMEM
    budget, never the full row extent (review fix: fallback is the smallest
    aligned block, usually 8).  Aim for >= ~4 inner steps per core so the
    BlockSpec double-buffering has DMA to overlap."""
    rb_budget = max(align, (budget_bytes // max(row_bytes, 1)) // align * align)
    target = -(-n_rows // (n_par * 4))                    # cdiv: ~4 steps/core
    rb_steps = max(align, -(-target // align) * align)    # round up to alignment
    return max(align, min(rb_budget, rb_steps))


def _reduce_kernel(x_ref, acc_ref):
    """Streaming instance-norm + collapsed elementwise chain + row-block sum.

    acc_ref is the resident (1, 8, L) accumulator: only vreg-slab (VALU) adds
    happen per block; the cross-sublane collapse and the 1/(N*C) scaling are
    hoisted to the wrapper (review: keep XLU work off the hot loop)."""
    i = pl.program_id(1)                       # inner "arbitrary" reduction axis

    @pl.when(i == 0)
    def _init():
        acc_ref[...] = jnp.zeros_like(acc_ref)

    xb = x_ref[...].astype(jnp.float32)                        # (rb, L)
    rb, L = xb.shape

    # nn.InstanceNorm2d(affine=False): per-(n, c) stats over spatial = per row.
    # One-pass form (E[x^2] - mean^2): one fewer traversal of xb than two-pass.
    mu = jnp.mean(xb, axis=1, keepdims=True)
    ex2 = jnp.mean(xb * xb, axis=1, keepdims=True)
    var = jnp.maximum(ex2 - mu * mu, 0.0)                      # biased, clamped
    xn = (xb - mu) * jax.lax.rsqrt(var + jnp.float32(_EPS))

    # round_ -> cos -> lt_(0.5) -> trunc_ -> arctan -> masked_fill(<0.5, 0)
    # -> fmax(0.5) collapses exactly to: pi/4 where cos(round(xn)) < 0.5,
    # else 0.5 (single EUP cos, no arctan/trunc/fmax needed).
    y = jnp.where(jnp.cos(jnp.round(xn)) < _HALF, _ATAN1, _HALF)

    # Sum vreg slabs (plain VALU adds); keep the 8 sublanes live.
    acc_ref[...] += jnp.sum(y.reshape(rb // 8, 8, L), axis=0)[None]


def _mm_idft_kernel(m_ref, csv_ref, csh_ref, e_ref):
    """torch.mm(m, m) + ifft2 via a fused block matmul against the symmetric
    IDFT bases: E = (csv @ (m @ m)) @ csh, with csv = [Cn; Sn] (2H, H) and
    csh = [Cn, Sn] (H, 2H), each of Cn/Sn carrying a 1/H factor.  The four
    HxH products come out as one lane-dense (2H, 2H) slab (review: no tiny
    MXU-under-filling dots, no masked stores)."""
    m2 = jnp.dot(m_ref[...], m_ref[...], preferred_element_type=jnp.float32)
    d = jnp.dot(csv_ref[...], m2, preferred_element_type=jnp.float32)
    e_ref[...] = jnp.dot(d, csh_ref[...], preferred_element_type=jnp.float32)


def _idft_bases(n):
    """Stacked symmetric inverse-DFT bases, 1/n scaling baked in."""
    k = np.arange(n)
    ang = 2.0 * np.pi * np.outer(k, k) / n
    cos = (np.cos(ang) / n).astype(np.float32)
    sin = (np.sin(ang) / n).astype(np.float32)
    csv = np.concatenate([cos, sin], axis=0)          # (2n, n)
    csh = np.concatenate([cos, sin], axis=1)          # (n, 2n)
    return jnp.asarray(csv), jnp.asarray(csh)


@jax.jit
def _preprocess_and_calculate(x):
    N, C, H, W = x.shape
    assert H == W, "torch.mm(x, x) on the (H, W) mean requires H == W"
    R, L = N * C, H * W

    x2 = x.reshape(R, L)                       # lane-dense streaming layout
    itemsize = x2.dtype.itemsize
    align = {4: 8, 2: 16, 1: 32}.get(itemsize, 8)     # sublane alignment / dtype

    n_cores, vmem_cap = _tpu_topology()

    # Generation-aware per-input-buffer budget: bigger tiles on 128-MiB-VMEM
    # chips (v5e/v6e), conservative on v7x so 2 in-flight buffers + accumulator
    # + headroom stay well under 64 MiB.
    budget = (16 << 20) if vmem_cap >= (96 << 20) else (8 << 20)

    # 2-way outer partial-sum split only on 2-TensorCore chips; 1-TC chips skip
    # it (no extra writeback / wrapper reduce).
    n_par = 2 if (n_cores >= 2 and R > 2 * align) else 1

    rb = _pick_row_block(R, L * itemsize, n_par, budget, align)
    inner = -(-R // (n_par * rb))              # cdiv
    r_pad = n_par * inner * rb
    pad = r_pad - R
    if pad:
        # Zero rows normalize to xn == 0 -> contribute exactly 0.5 per lane;
        # subtracted below, so no in-kernel masking is needed.
        x2 = jnp.concatenate([x2, jnp.zeros((pad, L), x2.dtype)], axis=0)

    block_bytes = rb * L * itemsize
    acc_bytes = 8 * L * 4
    vmem_limit = 2 * block_bytes + 2 * acc_bytes + (4 << 20)
    vmem_limit = int(max(min(vmem_limit, vmem_cap - (8 << 20)), 8 << 20))

    partial = pl.pallas_call(
        _reduce_kernel,
        grid=(n_par, inner),
        in_specs=[pl.BlockSpec((rb, L), lambda p, i: (p * inner + i, 0))],
        out_specs=pl.BlockSpec((1, 8, L), lambda p, i: (p, 0, 0)),
        out_shape=jax.ShapeDtypeStruct((n_par, 8, L), jnp.float32),
        compiler_params=pltpu.CompilerParams(
            dimension_semantics=("parallel", "arbitrary"),
            vmem_limit_bytes=vmem_limit),
        cost_estimate=pl.CostEstimate(
            flops=10 * r_pad * L,
            transcendentals=r_pad * L + r_pad,
            bytes_accessed=r_pad * L * itemsize + n_par * 8 * L * 4),
    )(x2)

    # Collapse per-core partials + the 8 live sublanes, remove the padded-row
    # contribution, scale by 1/(N*C) -> the (H, W) mean.
    total = jnp.sum(partial, axis=(0, 1)) - jnp.float32(0.5) * pad
    m = (total * jnp.float32(1.0 / R)).reshape(H, W)

    if H >= _MM_IDFT_PALLAS_MIN_H:
        csv, csh = _idft_bases(H)
        e = pl.pallas_call(
            _mm_idft_kernel,
            grid=(1,),
            in_specs=[pl.BlockSpec((H, H), lambda i: (0, 0)),
                      pl.BlockSpec((2 * H, H), lambda i: (0, 0)),
                      pl.BlockSpec((H, 2 * H), lambda i: (0, 0))],
            out_specs=pl.BlockSpec((2 * H, 2 * H), lambda i: (0, 0)),
            out_shape=jax.ShapeDtypeStruct((2 * H, 2 * H), jnp.float32),
            compiler_params=pltpu.CompilerParams(
                dimension_semantics=("arbitrary",),
                vmem_limit_bytes=int(min(96 * H * H + (8 << 20),
                                         vmem_cap - (8 << 20)))),
            cost_estimate=pl.CostEstimate(
                flops=14 * H ** 3, transcendentals=0,
                bytes_accessed=(H * H + 4 * H * H + 4 * H * H) * 4),
        )(m, csv, csh)
        re = e[:H, :H] - e[H:, H:]
        im = e[:H, H:] + e[H:, :H]
        # TODO(synk): tile _mm_idft_kernel (or switch to an FFT formulation)
        # once the (2H, 2H) intermediates stop fitting VMEM for very large H.
        return re + 1j * im
    else:
        # Tiny problem: an extra kernel launch costs more than the work.
        m2 = jnp.dot(m, m, preferred_element_type=jnp.float32)   # torch.mm
        return jnp.fft.ifft2(m2).astype(jnp.complex64)           # torch.fft.ifft2


def forward(x):
    """Mirrors PreprocessAndCalculateModel.forward: returns (output, used_apis)."""
    output = _preprocess_and_calculate(x)
    used_apis_sorted = sorted(set(_USED_APIS), key=_USED_APIS.index)
    return output, used_apis_sorted


@jax.jit
def _reference(x):
    """Pure-JAX reference with the full (non-collapsed) elementwise chain."""
    xf = x.astype(jnp.float32)
    mu = jnp.mean(xf, axis=(2, 3), keepdims=True)
    var = jnp.mean((xf - mu) ** 2, axis=(2, 3), keepdims=True)
    y = (xf - mu) * jax.lax.rsqrt(var + _EPS)
    y = jnp.round(y)
    y = jnp.cos(y)
    y = (y < 0.5).astype(jnp.float32)
    y = jnp.trunc(y)
    y = jnp.arctan(y)
    y = jnp.where(y < 0.5, 0.0, y)
    y = jnp.maximum(y, 0.5)
    m = jnp.mean(y, axis=(0, 1))
    m = m @ m
    return jnp.fft.ifft2(m)


if __name__ == "__main__":
    key = jax.random.PRNGKey(0)
    # InstanceNorm2d is affine=False, so channel count is free; square spatial
    # so torch.mm is valid.  N*C = 32 -> row block 8, 4 pipelined grid steps.
    x = jax.random.normal(key, (8, 4, 16, 16), dtype=jnp.float32)

    out, apis = forward(x)
    out = jax.block_until_ready(out)

    assert out.shape == (16, 16) and jnp.iscomplexobj(out)
    assert len(apis) == 10

    ref = jax.block_until_ready(_reference(x))
    np.testing.assert_allclose(np.asarray(out), np.asarray(ref),
                               rtol=1e-2, atol=1e-2)

    print("KERNEL_OK")
</pallas_src>

<mosaic_0001>
module attributes {stable_mosaic.version = 11 : i64} {
  func.func @_reduce_kernel(%arg0: i32, %arg1: i32, %arg2: memref<8x256xf32, #tpu.memory_space<vmem>>, %arg3: memref<1x8x256xf32, #tpu.memory_space<vmem>>) attributes {dimension_semantics = [#tpu.dimension_semantics<parallel>, #tpu.dimension_semantics<arbitrary>], iteration_bounds = array<i64: 1, 4>, scalar_prefetch = 0 : i64, scratch_operands = 0 : i64, tpu.core_type = #tpu.core_type<tc>, window_params = [{transform_indices = @transform_0, window_bounds = array<i64: 8, 256>}, {transform_indices = @transform_1, window_bounds = array<i64: 1, 8, 256>}]} {
    %c0_i32 = arith.constant 0 : i32
    %0 = arith.cmpi eq, %arg1, %c0_i32 : i32
    %1 = arith.extui %0 : i1 to i32
    %c0_i32_0 = arith.constant 0 : i32
    %2 = arith.cmpi ne, %1, %c0_i32_0 : i32
    scf.if %2 {
      %cst_17 = arith.constant 0.000000e+00 : f32
      %37 = vector.broadcast %cst_17 : f32 to vector<1x8x256xf32>
      %c0_18 = arith.constant 0 : index
      %c0_19 = arith.constant 0 : index
      %c0_20 = arith.constant 0 : index
      %38 = vector.load %arg3[%c0_18, %c0_19, %c0_20] : memref<1x8x256xf32, #tpu.memory_space<vmem>>, vector<1x8x256xf32>
      tpu.vector_store %arg3[%c0_18, %c0_19, %c0_20], %37 {strides = array<i32>} : memref<1x8x256xf32, #tpu.memory_space<vmem>>, vector<1x8x256xf32>,
    } else {
    }
    %c0 = arith.constant 0 : index
    %c0_1 = arith.constant 0 : index
    %3 = vector.load %arg2[%c0, %c0_1] : memref<8x256xf32, #tpu.memory_space<vmem>>, vector<8x256xf32>
    %cst = arith.constant dense<0.000000e+00> : vector<8xf32>
    %4 = vector.multi_reduction <add>, %3, %cst [1] : vector<8x256xf32> to vector<8xf32>
    %5 = vector.shape_cast %4 : vector<8xf32> to vector<8x1xf32>
    %cst_2 = arith.constant 2.560000e+02 : f32
    %6 = vector.broadcast %cst_2 : f32 to vector<8x1xf32>
    %7 = arith.divf %5, %6 : vector<8x1xf32>
    %8 = arith.mulf %3, %3 : vector<8x256xf32>
    %cst_3 = arith.constant dense<0.000000e+00> : vector<8xf32>
    %9 = vector.multi_reduction <add>, %8, %cst_3 [1] : vector<8x256xf32> to vector<8xf32>
    %10 = vector.shape_cast %9 : vector<8xf32> to vector<8x1xf32>
    %cst_4 = arith.constant 2.560000e+02 : f32
    %11 = vector.broadcast %cst_4 : f32 to vector<8x1xf32>
    %12 = arith.divf %10, %11 : vector<8x1xf32>
    %13 = arith.mulf %7, %7 : vector<8x1xf32>
    %14 = arith.subf %12, %13 : vector<8x1xf32>
    %cst_5 = arith.constant 0.000000e+00 : f32
    %15 = vector.broadcast %cst_5 : f32 to vector<8x1xf32>
    %16 = arith.maximumf %14, %15 : vector<8x1xf32>
    %17 = vector.broadcast %7 : vector<8x1xf32> to vector<8x256xf32>
    %18 = arith.subf %3, %17 : vector<8x256xf32>
    %cst_6 = arith.constant 9.99999974E-6 : f32
    %19 = vector.broadcast %cst_6 : f32 to vector<8x1xf32>
    %20 = arith.addf %16, %19 : vector<8x1xf32>
    %21 = math.rsqrt %20 : vector<8x1xf32>
    %22 = vector.broadcast %21 : vector<8x1xf32> to vector<8x256xf32>
    %23 = arith.mulf %18, %22 : vector<8x256xf32>
    %24 = math.roundeven %23 : vector<8x256xf32>
    %25 = math.cos %24 : vector<8x256xf32>
    %cst_7 = arith.constant 5.000000e-01 : f32
    %26 = vector.broadcast %cst_7 : f32 to vector<8x256xf32>
    %27 = arith.cmpf olt, %25, %26 : vector<8x256xf32>
    %cst_8 = arith.constant 0.785398185 : f32
    %cst_9 = arith.constant 5.000000e-01 : f32
    %28 = vector.broadcast %cst_8 : f32 to vector<8x256xf32>
    %29 = vector.broadcast %cst_9 : f32 to vector<8x256xf32>
    %30 = arith.select %27, %28, %29 : vector<8x256xi1>, vector<8x256xf32>
    %c0_10 = arith.constant 0 : index
    %c0_11 = arith.constant 0 : index
    %c0_12 = arith.constant 0 : index
    %31 = vector.load %arg3[%c0_10, %c0_11, %c0_12] : memref<1x8x256xf32, #tpu.memory_space<vmem>>, vector<1x8x256xf32>
    %32 = vector.shape_cast %30 : vector<8x256xf32> to vector<1x8x256xf32>
    %cst_13 = arith.constant dense<0.000000e+00> : vector<8x256xf32>
    %33 = vector.multi_reduction <add>, %32, %cst_13 [0] : vector<1x8x256xf32> to vector<8x256xf32>
    %34 = vector.shape_cast %33 : vector<8x256xf32> to vector<1x8x256xf32>
    %35 = arith.addf %31, %34 : vector<1x8x256xf32>
    %c0_14 = arith.constant 0 : index
    %c0_15 = arith.constant 0 : index
    %c0_16 = arith.constant 0 : index
    %36 = vector.load %arg3[%c0_14, %c0_15, %c0_16] : memref<1x8x256xf32, #tpu.memory_space<vmem>>, vector<1x8x256xf32>
    tpu.vector_store %arg3[%c0_14, %c0_15, %c0_16], %35 {strides = array<i32>} : memref<1x8x256xf32, #tpu.memory_space<vmem>>, vector<1x8x256xf32>,
    return
  }
  func.func @transform_0(%arg0: i32, %arg1: i32) -> (i32, i32) {
    %c4_i32 = arith.constant 4 : i32
    %0 = arith.muli %arg0, %c4_i32 : i32
    %1 = arith.addi %0, %arg1 : i32
    %c0_i32 = arith.constant 0 : i32
    %c0_i32_0 = arith.constant 0 : i32
    return %1, %c0_i32 : i32, i32
  }
  func.func @transform_1(%arg0: i32, %arg1: i32) -> (i32, i32, i32) {
    %c0_i32 = arith.constant 0 : i32
    %c0_i32_0 = arith.constant 0 : i32
    %c0_i32_1 = arith.constant 0 : i32
    return %arg0, %c0_i32, %c0_i32_0 : i32, i32, i32
  }
}

</mosaic_0001>

<bundles_post_ra>
// kernel: custom-call
= control target key start
LH: loop header
LB: loop body
LE: loop exit
PB: predicated region body
PF: predicated region fallthrough
CT: control target
= control target key end

     0   :  { %s105_s0 = inlined_call_operand.vmem [shape: f32[16,16], index: 0, kind: input, shape index: {}]   ;;  %s106_s1 = inlined_call_operand.vmem [shape: f32[16,16], index: 1, kind: input, shape index: {}]   ;;  %s107_s2 = inlined_call_operand.hbm [shape: c64[16,16], index: 2, kind: output, shape index: {}]  }
   0x1   :  { %s3_s11 = scalar_lea.hbm %s107_s2, 16 }
   0x2   :  { %4 = vsyncpa [#allocation0], 0  ;;  %s6_s14 = sshll.u32 %s105_s0, 4  ;;  %s8_s17 = sshll.u32 %s107_s2, 4  ;;  %s7_s14 = int_to_ptr.vmem [resolvable:$true] %s6_s14  ;;  %s9_s17 = int_to_ptr.hbm [resolvable:$true] %s8_s17 }
   0x3   :  { %11 = dma.vmem_to_hbm [thread:$0]  %s7_s14, 256, %s9_s17, [#allocation0] }
   0x4   :  { %74 = dma.done.wait [#allocation0], 256  }
   0x5   :  { %75 = vsyncadd [#allocation0], 4294967040 }
   0x6   :  { %14 = vsyncpa [#allocation0], 1 }
   0x7   :  { %15 = vsyncpa [#allocation1], 0  ;;  %s17_s20 = sshll.u32 %s106_s1, 4  ;;  %s19_s21 = sshll.u32 %s3_s11, 4  ;;  %s18_s20 = int_to_ptr.vmem [resolvable:$true] %s17_s20  ;;  %s20_s21 = int_to_ptr.hbm [resolvable:$true] %s19_s21 }
   0x8   :  { %22 = dma.vmem_to_hbm [thread:$0]  %s18_s20, 256, %s20_s21, [#allocation1] }
   0x9   :  { %76 = dma.done.wait [#allocation1], 256  }
   0xa   :  { %77 = vsyncadd [#allocation1], 4294967040 }
   0xb   :  { %25 = vsyncpa [#allocation1], 1 }

// kernel: _preprocess_and_calculate.1
= control target key start
LH: loop header
LB: loop body
LE: loop exit
PB: predicated region body
PF: predicated region fallthrough
CT: control target
= control target key end

     0   :  { %s684_s6 = smov 0   ;;  %s686_s7 = smov 0   ;;  %s918_s0 = inlined_call_operand.vmem [shape: f32[32,256], index: 0, kind: input, shape index: {}]   ;;  %s919_s1 = inlined_call_operand.vmem [shape: f32[1,8,256], index: 1, kind: output, shape index: {}]  }
   0x1   :  { %s688_s8 = smov 0  }
   0x2 LB: > { %s20_s9 = sadd.s32 1, %s658_s7  ;;  %p572_p0 = scmp.ge.s32.totalorder %s662_s8, 1  ;;  %s662_s8 = sphi %s688_s8, %s11_s8   ;;  %s658_s7 = sphi %s686_s7, %s925_s7   ;;  %s654_s6 = sphi %s684_s6, %s924_s6  }
   0x3   : > { %p21_p1 = scmp.ge.s32.totalorder %s20_s9, 4  ;;  %p107_p2 = scmp.lt.s32.totalorder %s662_s8, 5 }
   0x5   : > { %s927_s9 = smov (%p21_p1, %s20_s9), 0  ;;  %p108_p3 = pnand %p572_p0, %p107_p2 }
   0x6   : > { %p131_p4 = scmp.lt.s32.totalorder (!%p108_p3), %s654_s6, 3  ;;  %p575_p5 = scmp.ne.s32.totalorder (!%p108_p3), %s654_s6, 0 }
   0x7   : > { %111 = sbr.rel (%p108_p3) target bundleno = 303 (0x12f), region = 24 }
   0xc   : > { %s132_s10 = scalar_select %p131_p4, %s654_s6, 3 }
   0xd   : > { %146 = sbr.rel (%p575_p5) target bundleno = 21 (0x15), region = 28 }
   0xe   : > { %s585_s11 = sshll.u32 %s132_s10, 4 }
   0xf   : > { %s135_s14 = scalar_lea.vmem %s918_s0, %s585_s11 }
  0x12   : > { %v664_v0 = vmov 0.0  }
  0x13   : > { %147 = vst [vmem:[%s919_s1] sm:$0xff] %v664_v0 }
  0x14   : > { %148 = vst [vmem:[%s919_s1 + $0x8] sm:$0xff] %v664_v0 }
  0x15 PF: > { %v149_v1 = vld [vmem:[%s135_s14] sm:$0xff]  ;;  %v150_v2 = vld [vmem:[%s135_s14 + $0x8] sm:$0xff]  ;;  %v665_v7 = vmov 256.0  }
  0x16   : > { %v151_v3 = vadd.f32 %v150_v2, %v149_v1  ;;  %v162_v4 = vmul.f32 %v149_v1, %v149_v1  ;;  %v163_v5 = vmul.f32 %v150_v2, %v150_v2  ;;  %636 = vrcp.f32 %v665_v7 }
  0x18   : > { %152 = vadd.xlane.f32.xlu0 %v151_v3  ;;  %v164_v6 = vadd.f32 %v163_v5, %v162_v4 }
  0x1c   : > { %v637_v8 = vpop.eup %636 }
  0x1d   : > { %v155_v9 = vmul.f32 256.0, %v637_v8  ;;  %vm159_vm0 = vweird.f32 %v637_v8 }
  0x1f   : > { %v156_v10 = vsub.f32 1.0, %v155_v9 }
  0x20   : > { %165 = vadd.xlane.f32.xlu0 %v164_v6  ;;  %v666_v6 = vmov 683565275  }
  0x21   : > { %v157_v11 = vmul.f32 %v637_v8, %v156_v10 }
  0x23   : > { %v158_v12 = vadd.f32 %v637_v8, %v157_v11 }
  0x25   : > { %v160_v14 = vsel %vm159_vm0, %v637_v8, %v158_v12  ;;  %v667_v8 = vmov 2475754826   ;;  %v668_v12 = vmov 2131351028  }
  0x8b   : > { %v153_v13 = vpop.xlane.xlu0 %152 }
  0x8c   : > { %v161_v15 = vmul.f32 %v160_v14, %v153_v13 }
  0x8e   : > { %v168_v18 = vmul.f32 %v161_v15, %v161_v15  ;;  %v171_v28 = vsub.f32 %v149_v1, %v161_v15  ;;  %v172_v29 = vsub.f32 %v150_v2, %v161_v15  ;;  %v669_v15 = vmov 2102212464  }
  0x93   : > { %v166_v16 = vpop.xlane.xlu0 %165 }
  0x94   : > { %v167_v17 = vmul.f32 %v166_v16, %v160_v14 }
  0x96   : > { %v169_v19 = vsub.f32 %v167_v17, %v168_v18  ;;  %v670_v18 = vmov 920167782  }
  0x98   : > { %v170_v20 = vmax.f32 %v169_v19, 0.0 }
  0x9a   : > { %v173_v21 = vadd.f32 1e-05, %v170_v20 }
  0x9c   : > { %638 = vrsqrt.f32 %v173_v21  ;;  %vm180_vm2 = vweird.f32 %v173_v21 }
  0xa2   : > { %v639_v22 = vpop.eup %638 }
  0xa3   : > { %v175_v23 = vmul.f32 %v639_v22, %v173_v21  ;;  %vm181_vm1 = vweird.f32 %v639_v22  ;;  %v671_v21 = vmov 1326507024  }
  0xa4   : > { %vm182_vm3 = vmor %vm180_vm2, %vm181_vm1 }
  0xa5   : > { %v176_v24 = vmul.f32 %v639_v22, %v175_v23 }
  0xa7   : > { %v177_v25 = vmul.f32 0.5, %v176_v24 }
  0xa9   : > { %v178_v26 = vsub.f32 1.5, %v177_v25 }
  0xab   : > { %v179_v27 = vmul.f32 %v639_v22, %v178_v26 }
  0xad   : > { %v183_v30 = vsel %vm182_vm3, %v639_v22, %v179_v27 }
  0xae   : > { %v184_v31 = vmul.f32 %v183_v30, %v171_v28  ;;  %v185_v32 = vmul.f32 %v183_v30, %v172_v29 }
  0xb0   : > { %v588_v33 = vcvt.f32.s32 %v184_v31  ;;  %v596_v34 = vcvt.f32.s32 %v185_v32  ;;  %v586_v36 = vand.u32 2147483647, %v184_v31  ;;  %v591_v39 = vand.u32 2147483648, %v184_v31 }
  0xb1   : > { %v594_v40 = vand.u32 2147483647, %v185_v32  ;;  %v599_v42 = vand.u32 2147483648, %v185_v32 }
  0xb2   : > { %v589_v35 = vcvt.s32.f32 %v588_v33  ;;  %v597_v37 = vcvt.s32.f32 %v596_v34  ;;  %vm587_vm4 = vcmp.lt.f32.partialorder %v586_v36, 8388608.0 }
  0xb3   : > { %vm595_vm5 = vcmp.lt.f32.partialorder %v594_v40, 8388608.0 }
  0xb4   : > { %v590_v38 = vand.u32 2147483647, %v589_v35  ;;  %v598_v41 = vand.u32 2147483647, %v597_v37 }
  0xb6   : > { %v592_v43 = vor.u32 %v591_v39, %v590_v38  ;;  %v600_v44 = vor.u32 %v599_v42, %v598_v41 }
  0xb8   : > { %v711_v45 = vsel %vm587_vm4, %v592_v43, %v184_v31  ;;  %v713_v46 = vsel %vm595_vm5, %v600_v44, %v185_v32 }
  0xb9   : > { %v188_v47 = vand.u32 2147483647, %v711_v45  ;;  %v191_v48 = vand.u32 2139095040, %v711_v45  ;;  %v342_v49 = vand.u32 2147483647, %v713_v46  ;;  %v345_v50 = vand.u32 2139095040, %v713_v46 }
  0xbb   : > { %v192_v51 = vshrl.u32 %v191_v48, 23  ;;  %v195_v52 = vand.u32 8388607, %v188_v47  ;;  %v346_v53 = vshrl.u32 %v345_v50, 23  ;;  %v349_v56 = vand.u32 8388607, %v342_v49 }
  0xbd   : > { %v576_v54 = vadd.s32 4294967169, %v192_v51  ;;  %v196_v55 = vor.u32 8388608, %v195_v52  ;;  %v579_v57 = vadd.s32 4294967169, %v346_v53  ;;  %v350_v61 = vor.u32 8388608, %v349_v56 }
  0xbf   : > { %v198_v58 = vadd.s32 1, %v576_v54  ;;  %v352_v59 = vadd.s32 1, %v579_v57  ;;  %v723_v60 = vshll.u32 %v196_v55, 8  ;;  %v730_v4 = vshll.u32 %v350_v61, 8 }
  0xc1   : > { %vm199_vm6 = vcmp.gt.s32.totalorder %v198_v58, 0  ;;  %vm353_vm7 = vcmp.gt.s32.totalorder %v352_v59, 0  ;;  %v726_v2 = vand.u32 65535, %v723_v60  ;;  %v238_v10 = vshrl.u32 %v723_v60, 16 }
  0xc2   : > { %v200_v62 = vsel %vm199_vm6, %v198_v58, 0  ;;  %v354_v0 = vsel %vm353_vm7, %v352_v59, 0 }
  0xc3   : > { %v202_v63 = vand.u32 31, %v200_v62  ;;  %v728_v3 = vand.u32 31, %v354_v0  ;;  %v732_v5 = vshrl.u32 %v200_v62, 5  ;;  %v770_v53 = vshrl.u32 %v354_v0, 5 }
  0xc5   : > { %v203_v1 = vsub.s32 32, %v202_v63  ;;  %v205_v7 = vshll.u32 %v666_v6, %v202_v63  ;;  %v208_v9 = vshll.u32 %v667_v8, %v202_v63  ;;  %v211_v14 = vshll.u32 %v668_v12, %v202_v63 }
  0xc6   : > { %v214_v17 = vshll.u32 %v669_v15, %v202_v63  ;;  %v217_v20 = vshll.u32 %v670_v18, %v202_v63  ;;  %v742_v26 = vsub.s32 32, %v728_v3  ;;  %vm220_vm8 = vcmp.lt.s32.totalorder %v732_v5, 1 }
  0xc7   : > { %v206_v11 = vshrl.u32 %v667_v8, %v203_v1  ;;  %v209_v13 = vshrl.u32 %v668_v12, %v203_v1  ;;  %v212_v16 = vshrl.u32 %v669_v15, %v203_v1  ;;  %v215_v19 = vshrl.u32 %v670_v18, %v203_v1 }
  0xc8   : > { %v218_v22 = vshrl.u32 %v671_v21, %v203_v1  ;;  %vm221_vm9 = vcmp.lt.s32.totalorder %v732_v5, 2  ;;  %v204_v29 = vshrl.u32 %v666_v6, %v203_v1  ;;  %vm223_vm10 = vcmp.lt.s32.totalorder %v732_v5, 4 }
  0xc9   : > { %v207_v23 = vor.u32 %v206_v11, %v205_v7  ;;  %v210_v24 = vor.u32 %v209_v13, %v208_v9  ;;  %v213_v25 = vor.u32 %v212_v16, %v211_v14  ;;  %v216_v27 = vor.u32 %v215_v19, %v214_v17 }
  0xca   : > { %v219_v28 = vor.u32 %v218_v22, %v217_v20  ;;  %vm222_vm11 = vcmp.lt.s32.totalorder %v732_v5, 3  ;;  %v359_v34 = vshll.u32 %v666_v6, %v728_v3  ;;  %v360_v38 = vshrl.u32 %v667_v8, %v742_v26 }
  0xcb   : > { %v228_v30 = vsel %vm220_vm8, %v207_v23, %v210_v24  ;;  %v232_v31 = vsel %vm220_vm8, %v210_v24, %v213_v25  ;;  %v229_v32 = vsel %vm223_vm10, %v216_v27, 920167782  ;;  %v225_v35 = vsel %vm223_vm10, %v213_v25, 2102212464 }
  0xcc   : > { %v233_v33 = vsel %vm223_vm10, %v219_v28, 1326507024  ;;  %v230_v36 = vsel %vm222_vm11, %v213_v25, %v229_v32  ;;  %v362_v41 = vshll.u32 %v667_v8, %v728_v3  ;;  %v363_v42 = vshrl.u32 %v668_v12, %v742_v26 }
  0xcd   : > { %v234_v37 = vsel %vm222_vm11, %v216_v27, %v233_v33  ;;  %v231_v39 = vsel %vm221_vm9, %v228_v30, %v230_v36  ;;  %v224_v51 = vsel %vm220_vm8, %v204_v29, %v207_v23  ;;  %v226_v52 = vsel %vm222_vm11, %v210_v24, %v225_v35 }
  0xce   : > { %v235_v40 = vsel %vm221_vm9, %v232_v31, %v234_v37  ;;  %v261_v48 = vand.u32 65535, %v231_v39  ;;  %v262_v50 = vshrl.u32 %v231_v39, 16  ;;  %v772_v54 = vor.u32 %v360_v38, %v359_v34 }
  0xcf   : > { %v239_v43 = vand.u32 65535, %v235_v40  ;;  %v240_v44 = vshrl.u32 %v235_v40, 16  ;;  %v775_v57 = vor.u32 %v363_v42, %v362_v41  ;;  %v366_v58 = vshrl.u32 %v669_v15, %v742_v26 }
  0xd0   : > { %v264_v61 = vmul.u32 %v262_v50, %v726_v2  ;;  %v265_v62 = vmul.u32 %v261_v48, %v238_v10  ;;  %v365_v63 = vshll.u32 %v668_v12, %v728_v3  ;;  %v263_v7 = vmul.u32 %v261_v48, %v726_v2 }
  0xd1   : > { %v242_v55 = vmul.u32 %v240_v44, %v726_v2  ;;  %v243_v56 = vmul.u32 %v239_v43, %v238_v10  ;;  %v241_v59 = vmul.u32 %v239_v43, %v726_v2  ;;  %v244_v1 = vmul.u32 %v240_v44, %v238_v10 }
  0xd2   : > { %v266_v8 = vmul.u32 %v262_v50, %v238_v10  ;;  %v267_v14 = vshll.u32 %v264_v61, 16  ;;  %v269_v17 = vshll.u32 %v265_v62, 16  ;;  %v783_v19 = vor.u32 %v366_v58, %v365_v63 }
  0xd3   : > { %v245_v0 = vshll.u32 %v242_v55, 16  ;;  %v246_v9 = vshrl.u32 %v242_v55, 16  ;;  %v247_v11 = vshll.u32 %v243_v56, 16  ;;  %v248_v13 = vshrl.u32 %v243_v56, 16 }
  0xd4   : > { %v672_v20 = vmov 0   ;;  %vm271_vm13 = vc.u32 %v263_v7, %v267_v14  ;;  %v273_v23 = vadd.s32 %v267_v14, %v263_v7  ;;  %v369_v12 = vshrl.u32 %v670_v18, %v742_v26 }
  0xd5   : > { %vm249_vm12 = vc.u32 %v241_v59, %v245_v0  ;;  %v251_v16 = vadd.s32 %v245_v0, %v241_v59  ;;  %v272_v2 = vsel %vm271_vm13, 1, %v672_v20  ;;  %v368_v10 = vshll.u32 %v669_v15, %v728_v3 }
  0xd6   : > { %v250_v22 = vsel %vm249_vm12, 1, %v672_v20  ;;  %v274_v27 = vadd.s32 %v272_v2, %v266_v8  ;;  %vm275_vm15 = vc.u32 %v273_v23, %v269_v17  ;;  %v371_v28 = vshll.u32 %v670_v18, %v728_v3 }
  0xd7   : > { %v252_v24 = vadd.s32 %v250_v22, %v244_v1  ;;  %vm253_vm14 = vc.u32 %v251_v16, %v247_v11  ;;  %v276_v30 = vsel %vm275_vm15, 1, %v672_v20  ;;  %v370_v31 = vor.u32 %v369_v12, %v368_v10 }
  0xd8   : > { %v254_v25 = vsel %vm253_vm14, 1, %v672_v20  ;;  %v372_v32 = vshrl.u32 %v671_v21, %v742_v26  ;;  %v268_v33 = vshrl.u32 %v264_v61, 16  ;;  %v270_v34 = vshrl.u32 %v265_v62, 16 }
  0xd9   : > { %v256_v29 = vadd.s32 %v254_v25, %v252_v24  ;;  %v797_v35 = vadd.s32 %v273_v23, %v269_v17  ;;  %v278_v36 = vadd.s32 %v276_v30, %v274_v27  ;;  %vm374_vm0 = vcmp.lt.s32.totalorder %v770_v53, 1 }
  0xda   : > { %v373_v37 = vor.u32 %v372_v32, %v371_v28  ;;  %vm377_vm1 = vcmp.lt.s32.totalorder %v770_v53, 4  ;;  %vm376_vm2 = vcmp.lt.s32.totalorder %v770_v53, 3  ;;  %v382_v3 = vsel %vm374_vm0, %v772_v54, %v775_v57 }
  0xdb   : > { %v257_v15 = vadd.s32 %v256_v29, %v246_v9  ;;  %v279_v38 = vadd.s32 %v278_v36, %v268_v33  ;;  %v383_v18 = vsel %vm377_vm1, %v370_v31, 920167782  ;;  %vm375_vm3 = vcmp.lt.s32.totalorder %v770_v53, 2 }
  0xdc   : > { %v384_v39 = vsel %vm376_vm2, %v783_v19, %v383_v18  ;;  %v386_v40 = vsel %vm374_vm0, %v775_v57, %v783_v19  ;;  %v227_v41 = vsel %vm221_vm9, %v224_v51, %v226_v52  ;;  %v387_v44 = vsel %vm377_vm1, %v373_v37, 1326507024 }
  0xdd   : > { %v808_v21 = vadd.s32 %v257_v15, %v248_v13  ;;  %v280_v42 = vadd.s32 %v279_v38, %v270_v34  ;;  %v385_v43 = vsel %vm375_vm3, %v382_v3, %v384_v39  ;;  %v388_v48 = vsel %vm376_vm2, %v370_v31, %v387_v44 }
  0xde   : > { %v391_v50 = vand.u32 65535, %v730_v4  ;;  %v415_v55 = vand.u32 65535, %v385_v43  ;;  %v389_v5 = vsel %vm375_vm3, %v386_v40, %v388_v48  ;;  %v392_v51 = vshrl.u32 %v730_v4, 16 }
  0xdf   : > { %vm283_vm4 = vc.u32 %v808_v21, %v797_v35  ;;  %v284_v56 = vadd.s32 1, %v280_v42  ;;  %v416_v52 = vshrl.u32 %v385_v43, 16  ;;  %v281_v58 = vmul.u32 %v723_v60, %v227_v41 }
  0xe0   : > { %v393_v59 = vand.u32 65535, %v389_v5  ;;  %v394_v61 = vshrl.u32 %v389_v5, 16  ;;  %v419_v1 = vmul.u32 %v415_v55, %v392_v51  ;;  %v417_v9 = vmul.u32 %v415_v55, %v391_v50 }
  0xe1   : > { %v285_v62 = vsel %vm283_vm4, %v284_v56, %v280_v42  ;;  %v418_v63 = vmul.u32 %v416_v52, %v391_v50  ;;  %v420_v11 = vmul.u32 %v416_v52, %v392_v51  ;;  %v379_v29 = vsel %vm377_vm1, %v783_v19, 2102212464 }
  0xe2   : > { %v286_v0 = vadd.s32 %v285_v62, %v281_v58  ;;  %v396_v7 = vmul.u32 %v394_v61, %v391_v50  ;;  %v397_v8 = vmul.u32 %v393_v59, %v392_v51  ;;  %v395_v16 = vmul.u32 %v393_v59, %v391_v50 }
  0xe3   : > { %v421_v13 = vshll.u32 %v418_v63, 16  ;;  %v398_v17 = vmul.u32 %v394_v61, %v392_v51  ;;  %v423_v12 = vshll.u32 %v419_v1, 16  ;;  %v358_v31 = vshrl.u32 %v666_v6, %v742_v26 }
  0xe4   : > { %v287_v14 = vadd.s32 536870912, %v286_v0  ;;  %v399_v22 = vshll.u32 %v396_v7, 16  ;;  %v401_v23 = vshll.u32 %v397_v8, 16  ;;  %v400_v36 = vshrl.u32 %v396_v7, 16 }
  0xe5   : > { %vm425_vm5 = vc.u32 %v417_v9, %v421_v13  ;;  %v427_v24 = vadd.s32 %v421_v13, %v417_v9  ;;  %v378_v38 = vsel %vm374_vm0, %v358_v31, %v772_v54  ;;  %v380_v19 = vsel %vm376_vm2, %v775_v57, %v379_v29 }
  0xe6   : > { %v833_v60 = vshrl.u32 %v287_v14, 30  ;;  %vm403_vm6 = vc.u32 %v395_v16, %v399_v22  ;;  %v405_v2 = vadd.s32 %v399_v22, %v395_v16  ;;  %v426_v10 = vsel %vm425_vm5, 1, %v672_v20 }
  0xe7   : > { %v404_v25 = vsel %vm403_vm6, 1, %v672_v20  ;;  %v428_v27 = vadd.s32 %v426_v10, %v420_v11  ;;  %vm429_vm7 = vc.u32 %v427_v24, %v423_v12  ;;  %v422_v3 = vshrl.u32 %v418_v63, 16 }
  0xe8   : > { %v289_v28 = vshll.u32 %v833_v60, 30  ;;  %v406_v30 = vadd.s32 %v404_v25, %v398_v17  ;;  %vm407_vm8 = vc.u32 %v405_v2, %v401_v23  ;;  %v430_v33 = vsel %vm429_vm7, 1, %v672_v20 }
  0xe9   : > { %v408_v32 = vsel %vm407_vm8, 1, %v672_v20  ;;  %v432_v37 = vadd.s32 %v430_v33, %v428_v27  ;;  %v402_v26 = vshrl.u32 %v397_v8, 16  ;;  %v424_v39 = vshrl.u32 %v419_v1, 16 }
  0xea   : > { %v290_v34 = vsub.s32 %v286_v0, %v289_v28  ;;  %v410_v15 = vadd.s32 %v408_v32, %v406_v30  ;;  %v381_v41 = vsel %vm375_vm3, %v378_v38, %v380_v19  ;;  %v431_v44 = vadd.s32 %v427_v24, %v423_v12 }
  0xeb   : > { %v433_v40 = vadd.s32 %v432_v37, %v422_v3  ;;  %v435_v57 = vmul.u32 %v730_v4, %v381_v41  ;;  %v282_v51 = vadd.s32 %v797_v35, %v808_v21  ;;  %vm190_vm13 = vcmp.lt.s32.totalorder %v711_v45, 0 }
  0xec   : > { %vm291_vm9 = vcmp.lt.s32.totalorder %v290_v34, 0  ;;  %v292_v18 = vsub.s32 0, %v290_v34  ;;  %v411_v6 = vadd.s32 %v410_v15, %v400_v36  ;;  %vm862_vm14 = vcmp.le.f32.partialorder %v188_v47, 0.7853982 }
  0xed   : > { %v434_v48 = vadd.s32 %v433_v40, %v424_v39  ;;  %v312_v47 = vsub.s32 4, %v833_v60  ;;  %vm344_vm0 = vcmp.lt.s32.totalorder %v713_v46, 0  ;;  %vm880_vm3 = vcmp.le.f32.partialorder %v342_v49, 0.7853982  ;;  %v500_v49 = vld [vmem:[%s919_s1] sm:$0xff] }
  0xee   : > { %v293_v20 = vsel %vm291_vm9, %v292_v18, %v290_v34  ;;  %v412_v43 = vadd.s32 %v411_v6, %v402_v26  ;;  %vm331_vm5 = vweird.f32 %v711_v45 }
  0xef   : > { %v294_v42 = vclz %v293_v20  ;;  %v438_v50 = vadd.s32 1, %v434_v48  ;;  %v313_v37 = vsel %vm190_vm13, %v312_v47, %v833_v60  ;;  %v501_v47 = vld [vmem:[%s919_s1 + $0x8] sm:$0xff] }
  0xf0   : > { %vm437_vm10 = vc.u32 %v412_v43, %v431_v44  ;;  %v436_v27 = vadd.s32 %v431_v44, %v412_v43  ;;  %v315_v26 = vsel %vm862_vm14, 0, %v313_v37 }
  0xf1   : > { %v577_v54 = vadd.s32 4294967294, %v294_v42  ;;  %v439_v55 = vsel %vm437_vm10, %v438_v50, %v434_v48  ;;  %v332_v44 = vand.u32 3, %v315_v26  ;;  %vm485_vm10 = vweird.f32 %v713_v46 }
  0xf2   : > { %v440_v5 = vadd.s32 %v439_v55, %v435_v57 }
  0xf3   : > { %vm578_vm11 = vcmp.lt.s32.totalorder %v577_v54, 0  ;;  %vm334_vm1 = vcmp.eq.s32.totalorder %v332_v44, 0  ;;  %vm337_vm2 = vcmp.eq.s32.totalorder %v332_v44, 2  ;;  %vm333_vm4 = vcmp.lt.s32.totalorder %v332_v44, 2 }
  0xf4   : > { %v297_v56 = vsel %vm578_vm11, 0, %v577_v54  ;;  %v441_v53 = vadd.s32 536870912, %v440_v5 }
  0xf5   : > { %v298_v52 = vsub.s32 32, %v297_v56  ;;  %v302_v58 = vsub.s32 4294967266, %v297_v56  ;;  %v299_v59 = vshll.u32 %v290_v34, %v297_v56 }
  0xf6   : > { %v856_v63 = vshrl.u32 %v441_v53, 30 }
  0xf7   : > { %v300_v61 = vshrl.u32 %v282_v51, %v298_v52  ;;  %v303_v62 = vadd.s32 127, %v302_v58 }
  0xf8   : > { %v443_v7 = vshll.u32 %v856_v63, 30 }
  0xf9   : > { %v301_v1 = vor.u32 %v300_v61, %v299_v59  ;;  %v304_v0 = vshll.u32 %v303_v62, 23 }
  0xfa   : > { %v444_v8 = vsub.s32 %v440_v5, %v443_v7 }
  0xfb   : > { %v305_v4 = vor.u32 4788187, %v304_v0  ;;  %v308_v11 = vcvt.s32.f32 %v301_v1  ;;  %v466_v1 = vsub.s32 4, %v856_v63  ;;  %v673_v0 = vmov 0.5  }
  0xfc   : > { %vm445_vm12 = vcmp.lt.s32.totalorder %v444_v8, 0  ;;  %v446_v13 = vsub.s32 0, %v444_v8 }
  0xfd   : > { %v306_v9 = vand.u32 2147483647, %v305_v4 }
  0xfe   : > { %v447_v35 = vsel %vm445_vm12, %v446_v13, %v444_v8 }
  0xff   : > { %v309_v14 = vmul.f32 %v308_v11, %v306_v9  ;;  %v448_v16 = vclz %v447_v35 }
 0x101   : > { %v310_v21 = vxor.u32 2147483648, %v309_v14  ;;  %v580_v23 = vadd.s32 4294967294, %v448_v16 }
 0x103   : > { %v311_v22 = vsel %vm190_vm13, %v310_v21, %v309_v14  ;;  %vm581_vm15 = vcmp.lt.s32.totalorder %v580_v23, 0 }
 0x104   : > { %v314_v12 = vsel %vm862_vm14, %v711_v45, %v311_v22  ;;  %v451_v2 = vsel %vm581_vm15, 0, %v580_v23  ;;  %v467_v45 = vsel %vm344_vm0, %v466_v1, %v856_v63 }
 0x105   : > { %v316_v24 = vmul.f32 %v314_v12, %v314_v12  ;;  %v452_v28 = vsub.s32 32, %v451_v2  ;;  %v456_v29 = vsub.s32 4294967266, %v451_v2  ;;  %v453_v33 = vshll.u32 %v444_v8, %v451_v2 }
 0x106   : > { %v469_v21 = vsel %vm880_vm3, 0, %v467_v45 }
 0x107   : > { %v317_v10 = vmul.f32 -0.001358992, %v316_v24  ;;  %v324_v25 = vmul.f32 -0.00019511016, %v316_v24  ;;  %v454_v32 = vshrl.u32 %v436_v27, %v452_v28  ;;  %v457_v34 = vadd.s32 127, %v456_v29 }
 0x109   : > { %v318_v30 = vadd.f32 0.041655596, %v317_v10  ;;  %v325_v31 = vadd.f32 0.008332121, %v324_v25  ;;  %v455_v38 = vor.u32 %v454_v32, %v453_v33  ;;  %v458_v19 = vshll.u32 %v457_v34, 23 }
 0x10b   : > { %v319_v36 = vmul.f32 %v318_v30, %v316_v24  ;;  %v326_v15 = vmul.f32 %v325_v31, %v316_v24  ;;  %v459_v6 = vor.u32 4788187, %v458_v19  ;;  %v462_v41 = vcvt.s32.f32 %v455_v38 }
 0x10d   : > { %v320_v3 = vadd.f32 -0.4999988, %v319_v36  ;;  %v327_v18 = vadd.f32 -0.16666654, %v326_v15  ;;  %v460_v20 = vand.u32 2147483647, %v459_v6 }
 0x10f   : > { %v321_v39 = vmul.f32 %v320_v3, %v316_v24  ;;  %v328_v40 = vmul.f32 %v327_v18, %v316_v24  ;;  %v463_v48 = vmul.f32 %v462_v41, %v460_v20 }
 0x111   : > { %v322_v42 = vadd.f32 1.0, %v321_v39  ;;  %v329_v43 = vadd.f32 1.0, %v328_v40  ;;  %v464_v57 = vxor.u32 2147483648, %v463_v48 }
 0x113   : > { %v330_v54 = vmul.f32 %v329_v43, %v314_v12  ;;  %v338_v50 = vxor.u32 2147483648, %v322_v42  ;;  %v465_v56 = vsel %vm344_vm0, %v464_v57, %v463_v48  ;;  %v486_v12 = vand.u32 3, %v469_v21 }
 0x114   : > { %v468_v52 = vsel %vm880_vm3, %v713_v46, %v465_v56 }
 0x115   : > { %v335_v60 = vxor.u32 2147483648, %v330_v54  ;;  %v339_v51 = vsel %vm337_vm2, %v338_v50, %v330_v54  ;;  %v470_v53 = vmul.f32 %v468_v52, %v468_v52  ;;  %vm488_vm7 = vcmp.eq.s32.totalorder %v486_v12, 0 }
 0x116   : > { %vm491_vm8 = vcmp.eq.s32.totalorder %v486_v12, 2  ;;  %vm487_vm9 = vcmp.lt.s32.totalorder %v486_v12, 2 }
 0x117   : > { %v336_v5 = vsel %vm334_vm1, %v322_v42, %v335_v60  ;;  %v471_v61 = vmul.f32 -0.001358992, %v470_v53  ;;  %v478_v62 = vmul.f32 -0.00019511016, %v470_v53 }
 0x118   : > { %v340_v58 = vsel %vm333_vm4, %v336_v5, %v339_v51 }
 0x119   : > { %v341_v59 = vsel %vm331_vm5, nan, %v340_v58  ;;  %v472_v4 = vadd.f32 0.041655596, %v471_v61  ;;  %v479_v8 = vadd.f32 0.008332121, %v478_v62 }
 0x11a   : > { %vm496_vm6 = vcmp.lt.f32.partialorder %v341_v59, 0.5 }
 0x11b   : > { %v498_v7 = vsel %vm496_vm6, 0.7853982, %v673_v0  ;;  %v473_v11 = vmul.f32 %v472_v4, %v470_v53  ;;  %v480_v13 = vmul.f32 %v479_v8, %v470_v53 }
 0x11c   : > { %v504_v9 = vadd.f32 %v500_v49, %v498_v7 }
 0x11d   : > { %v474_v14 = vadd.f32 -0.4999988, %v473_v11  ;;  %v481_v35 = vadd.f32 -0.16666654, %v480_v13 }
 0x11e   : > { %506 = vst [vmem:[%s919_s1] sm:$0xff] %v504_v9 }
 0x11f   : > { %v475_v16 = vmul.f32 %v474_v14, %v470_v53  ;;  %v482_v17 = vmul.f32 %v481_v35, %v470_v53 }
 0x121   : > { %v476_v22 = vadd.f32 1.0, %v475_v16  ;;  %v483_v23 = vadd.f32 1.0, %v482_v17 }
 0x123   : > { %v484_v24 = vmul.f32 %v483_v23, %v468_v52  ;;  %v492_v2 = vxor.u32 2147483648, %v476_v22 }
 0x125   : > { %v489_v10 = vxor.u32 2147483648, %v484_v24  ;;  %v493_v27 = vsel %vm491_vm8, %v492_v2, %v484_v24 }
 0x127   : > { %v490_v25 = vsel %vm488_vm7, %v476_v22, %v489_v10 }
 0x128   : > { %v494_v63 = vsel %vm487_vm9, %v490_v25, %v493_v27 }
 0x129   : > { %v495_v28 = vsel %vm485_vm10, nan, %v494_v63 }
 0x12a   : > { %vm497_vm11 = vcmp.lt.f32.partialorder %v495_v28, 0.5 }
 0x12b   : > { %v499_v29 = vsel %vm497_vm11, 0.7853982, %v673_v0 }
 0x12c   : > { %v505_v30 = vadd.f32 %v501_v47, %v499_v29 }
 0x12e   : > { %507 = vst [vmem:[%s919_s1 + $0x8] sm:$0xff] %v505_v30 }
 0x12f PF: > { %s11_s8 = sadd.s32 1, %s662_s8   ;;  %s924_s6 = smov %s658_s7 }
 0x130   : > { %p8_p6 = scmp.ge.s32.totalorder %s11_s8, 6   ;;  %s925_s7 = smov %s927_s9 }
 0x132   :  { %10 = sbr.rel (!%p8_p6) target bundleno = 2 (0x2), region = 58 }

</bundles_post_ra>
